<compile_context>
chip_gen: v7x
topology: tpu7x:2x2x1
jax: 0.10.0
libtpu: 0.0.40
codegen_flags: <defaults>
</compile_context>

<pallas_src>
import jax
import jax.numpy as jnp
from jax import lax
from jax.experimental import pallas as pl
from jax.experimental.pallas import tpu as pltpu

_EPS = 1e-8  # nn.CosineSimilarity default eps


def _round_up(n, m):
    return ((n + m - 1) // m) * m


def _vmem_budget_bytes():
    # Generation-aware budget: ~75% of physical per-core VMEM
    # (~48 MiB on v7x, ~96 MiB on v5e/v6e). Conservative fallback otherwise.
    try:
        cap = int(pltpu.get_tpu_info().vmem_capacity_bytes)
    except Exception:
        cap = 64 << 20
    return (cap * 3) // 4


def _choose_tiles(B, Bp, H, itemsize, budget):
    """Pick (tm, tn) output-tile sizes and report the VMEM they need."""
    # dtype-correct sublane multiple (f32: 8, bf16: 16, int8/fp8: 32)
    sub = {4: 8, 2: 16, 1: 32}.get(itemsize, 8)

    def vmem_use(tm, tn):
        # double-buffered x / y input tiles + double-buffered f32 output tile
        return 2 * (tm + tn) * H * itemsize + 2 * tm * tn * 4

    tm_small = min(256, _round_up(B, sub))

    # Column tile: keep all of y resident when it fits (y is then streamed
    # from HBM exactly once instead of once per row-block).
    if vmem_use(tm_small, Bp) <= budget:
        tn = Bp
    else:
        tn = 128
        for cand in (4096, 2048, 1024, 512, 256, 128):
            if cand <= _round_up(Bp, 128) and vmem_use(tm_small, cand) <= budget:
                tn = cand
                break

    # Row tile: as large as fits.  If the column grid collapsed to a single
    # block, keep >= 2 row blocks so both v7x TensorCores get work.
    tm_cap = _round_up(B, sub)
    if tn >= Bp and B > sub:
        tm_cap = min(tm_cap, _round_up(pl.cdiv(B, 2), sub))
    tm = sub
    for cand in (2048, 1024, 512, 256, 128, 64, 32, 16, 8):
        c = min(cand, tm_cap)
        if c >= sub and c % sub == 0 and vmem_use(c, tn) <= budget:
            tm = c
            break
    return tm, tn, vmem_use(tm, tn)


def _make_cosine_kernel(temp, in_dtype, out_dtype):
    inv_temp = 1.0 / float(temp)
    is_f32 = jnp.dtype(in_dtype) == jnp.dtype(jnp.float32)

    def kernel(x_ref, y_ref, o_ref):
        # x_ref: (tm, H), y_ref: (tn, H)
        xf = x_ref[...].astype(jnp.float32)
        yf = y_ref[...].astype(jnp.float32)

        # Row norms fused into the kernel (tiles are resident anyway); the
        # reciprocals are taken per *row* (tm + tn exact divides), never per
        # output element -- the EUP stays off the per-element path.
        nx = jnp.sqrt(jnp.sum(xf * xf, axis=-1, keepdims=True))   # (tm, 1)
        ny = jnp.sqrt(jnp.sum(yf * yf, axis=-1, keepdims=True))   # (tn, 1)
        # Per-row eps clamp (matches current PyTorch, which clamps each norm;
        # older ATen clamped the product -- they only differ for degenerate
        # near-zero-norm rows).
        inv_nx = inv_temp / jnp.maximum(nx, _EPS)   # 1/temp folded in here
        inv_ny = 1.0 / jnp.maximum(ny, _EPS)

        # Bake 1/||y_n|| into the y tile *before* the matmul: the column scale
        # rides through the MXU for free, so the epilogue is one (tm,tn)*(tm,1)
        # VPU multiply (lane broadcast).  NT matmul -> no y transpose.
        if is_f32:
            lhs = xf
            rhs = yf * inv_ny
            prec = lax.Precision.HIGHEST          # full-f32 MXU passes
        else:
            lhs = x_ref[...]
            rhs = (yf * inv_ny).astype(in_dtype)  # keep bf16 fast path
            prec = lax.Precision.DEFAULT
        dots = lax.dot_general(
            lhs, rhs,
            dimension_numbers=(((1,), (1,)), ((), ())),
            preferred_element_type=jnp.float32,
            precision=prec)                                         # (tm, tn)

        o_ref[...] = (dots * inv_nx).astype(out_dtype)

    return kernel


def similarity(x, y, temp):
    """x: (B, 1, H), y: (1, Bp, H)  ->  (B, Bp) cosine similarity / temp."""
    assert x.ndim == 3 and y.ndim == 3
    assert x.shape[1] == 1 and y.shape[0] == 1
    assert x.shape[-1] == y.shape[-1]
    # TODO(synk): other nn.CosineSimilarity broadcast patterns (e.g. equal
    # shapes -> per-row similarity vector) are not implemented here.
    B, H = x.shape[0], x.shape[-1]
    Bp = y.shape[1]

    # Pure metadata reshapes -- no materialized zero-padded copies and no
    # output re-slice; ragged edges are handled by cdiv grids / full-dim blocks.
    x2 = x.reshape(B, H)
    y2 = y.reshape(Bp, H)
    itemsize = jnp.dtype(x.dtype).itemsize

    budget = _vmem_budget_bytes()
    tm, tn, need = _choose_tiles(B, Bp, H, itemsize, budget)
    grid = (pl.cdiv(B, tm), pl.cdiv(Bp, tn))
    # TODO(synk): add a K (hidden) grid axis marked "arbitrary" with an f32
    # VMEM accumulator if H ever gets large enough that one (tm,H)+(tn,H)
    # tile pair blows the VMEM budget.

    vmem_limit = int(max(min(budget, 2 * need + (4 << 20)), need + (4 << 20)))

    y_passes = grid[0] if grid[1] > 1 else 1
    cost = pl.CostEstimate(
        flops=2 * B * Bp * H + 3 * (grid[1] * B + grid[0] * Bp) * H,
        transcendentals=grid[1] * B + grid[0] * Bp,      # per-row sqrt
        bytes_accessed=B * H * itemsize                  # x read once
        + Bp * H * itemsize * y_passes                   # y re-streams
        + B * Bp * 4,                                    # output write
    )

    kernel = _make_cosine_kernel(temp, x.dtype, jnp.float32)
    out = pl.pallas_call(
        kernel,
        out_shape=jax.ShapeDtypeStruct((B, Bp), jnp.float32),
        grid_spec=pltpu.PrefetchScalarGridSpec(
            num_scalar_prefetch=0,
            grid=grid,
            in_specs=[
                pl.BlockSpec((tm, H), lambda i, j: (i, 0)),
                pl.BlockSpec((tn, H), lambda i, j: (j, 0)),
            ],
            out_specs=pl.BlockSpec((tm, tn), lambda i, j: (i, j)),
        ),
        compiler_params=pltpu.CompilerParams(
            dimension_semantics=("parallel", "parallel"),
            vmem_limit_bytes=vmem_limit),
        cost_estimate=cost,
    )(x2, y2)
    return out


def _reference(x, y, temp):
    # pure-JAX reference mirroring torch.nn.CosineSimilarity(dim=-1) / temp
    num = jnp.sum(x * y, axis=-1)
    nx = jnp.sqrt(jnp.sum(x * x, axis=-1))
    ny = jnp.sqrt(jnp.sum(y * y, axis=-1))
    return num / jnp.maximum(nx * ny, _EPS) / temp


if __name__ == "__main__":
    key = jax.random.PRNGKey(0)
    kx, ky = jax.random.split(key)

    B, H = 16, 64
    temp = 0.05  # typical contrastive temperature from the SimDiff config

    x = jax.random.normal(kx, (B, 1, H), dtype=jnp.float32)
    y = jax.random.normal(ky, (1, B, H), dtype=jnp.float32)

    out = similarity(x, y, temp)
    out = jax.block_until_ready(out)

    ref = _reference(x, y, temp)
    assert out.shape == (B, B), out.shape
    err = float(jnp.max(jnp.abs(out - ref)))
    assert jnp.allclose(out, ref, atol=1e-3, rtol=1e-3), f"mismatch, max|err|={err}"

    print("KERNEL_OK")
</pallas_src>

<mosaic_0001>
module attributes {stable_mosaic.version = 11 : i64} {
  func.func @kernel(%arg0: i32, %arg1: i32, %arg2: memref<8x64xf32, #tpu.memory_space<vmem>>, %arg3: memref<16x64xf32, #tpu.memory_space<vmem>>, %arg4: memref<8x16xf32, #tpu.memory_space<vmem>>) attributes {dimension_semantics = [#tpu.dimension_semantics<parallel>, #tpu.dimension_semantics<parallel>], iteration_bounds = array<i64: 2, 1>, scalar_prefetch = 0 : i64, scratch_operands = 0 : i64, tpu.core_type = #tpu.core_type<tc>, window_params = [{transform_indices = @transform_0, window_bounds = array<i64: 8, 64>}, {transform_indices = @transform_1, window_bounds = array<i64: 16, 64>}, {transform_indices = @transform_2, window_bounds = array<i64: 8, 16>}]} {
    %c0 = arith.constant 0 : index
    %c0_0 = arith.constant 0 : index
    %0 = vector.load %arg2[%c0, %c0_0] : memref<8x64xf32, #tpu.memory_space<vmem>>, vector<8x64xf32>
    %c0_1 = arith.constant 0 : index
    %c0_2 = arith.constant 0 : index
    %1 = vector.load %arg3[%c0_1, %c0_2] : memref<16x64xf32, #tpu.memory_space<vmem>>, vector<16x64xf32>
    %2 = arith.mulf %0, %0 : vector<8x64xf32>
    %cst = arith.constant dense<0.000000e+00> : vector<8xf32>
    %3 = vector.multi_reduction <add>, %2, %cst [1] : vector<8x64xf32> to vector<8xf32>
    %4 = vector.shape_cast %3 : vector<8xf32> to vector<8x1xf32>
    %5 = math.sqrt %4 : vector<8x1xf32>
    %6 = arith.mulf %1, %1 : vector<16x64xf32>
    %cst_3 = arith.constant dense<0.000000e+00> : vector<16xf32>
    %7 = vector.multi_reduction <add>, %6, %cst_3 [1] : vector<16x64xf32> to vector<16xf32>
    %8 = vector.shape_cast %7 : vector<16xf32> to vector<16x1xf32>
    %9 = math.sqrt %8 : vector<16x1xf32>
    %cst_4 = arith.constant 9.99999993E-9 : f32
    %10 = vector.broadcast %cst_4 : f32 to vector<8x1xf32>
    %11 = arith.maximumf %5, %10 : vector<8x1xf32>
    %cst_5 = arith.constant 2.000000e+01 : f32
    %12 = vector.broadcast %cst_5 : f32 to vector<8x1xf32>
    %13 = arith.divf %12, %11 : vector<8x1xf32>
    %cst_6 = arith.constant 9.99999993E-9 : f32
    %14 = vector.broadcast %cst_6 : f32 to vector<16x1xf32>
    %15 = arith.maximumf %9, %14 : vector<16x1xf32>
    %cst_7 = arith.constant 1.000000e+00 : f32
    %16 = vector.broadcast %cst_7 : f32 to vector<16x1xf32>
    %17 = arith.divf %16, %15 : vector<16x1xf32>
    %18 = vector.broadcast %17 : vector<16x1xf32> to vector<16x64xf32>
    %19 = arith.mulf %1, %18 : vector<16x64xf32>
    %cst_8 = arith.constant dense<0.000000e+00> : vector<8x16xf32>
    %20 = tpu.matmul %0, %19, %cst_8 {dimension_numbers = #tpu.dot_dimension_numbers<[1], [1], [0], [0], [0, 0, 1, 0], [], []>, precision = #tpu.contract_precision<fp32>} : vector<8x64xf32>, vector<16x64xf32>, vector<8x16xf32> -> vector<8x16xf32>
    %21 = vector.broadcast %13 : vector<8x1xf32> to vector<8x16xf32>
    %22 = arith.mulf %20, %21 : vector<8x16xf32>
    %c0_9 = arith.constant 0 : index
    %c0_10 = arith.constant 0 : index
    %23 = vector.load %arg4[%c0_9, %c0_10] : memref<8x16xf32, #tpu.memory_space<vmem>>, vector<8x16xf32>
    tpu.vector_store %arg4[%c0_9, %c0_10], %22 {strides = array<i32>} : memref<8x16xf32, #tpu.memory_space<vmem>>, vector<8x16xf32>,
    return
  }
  func.func @transform_0(%arg0: i32, %arg1: i32) -> (i32, i32) {
    %c0_i32 = arith.constant 0 : i32
    %c0_i32_0 = arith.constant 0 : i32
    return %arg0, %c0_i32 : i32, i32
  }
  func.func @transform_1(%arg0: i32, %arg1: i32) -> (i32, i32) {
    %c0_i32 = arith.constant 0 : i32
    %c0_i32_0 = arith.constant 0 : i32
    return %arg1, %c0_i32 : i32, i32
  }
  func.func @transform_2(%arg0: i32, %arg1: i32) -> (i32, i32) {
    %c0_i32 = arith.constant 0 : i32
    return %arg0, %arg1 : i32, i32
  }
}

</mosaic_0001>

<bundles_post_ra>
// kernel: tpu_custom_call.1
= control target key start
LH: loop header
LB: loop body
LE: loop exit
PB: predicated region body
PF: predicated region fallthrough
CT: control target
= control target key end

     0   :  { %7 = vsyncpa [#allocation3], 0  ;;  %s1425_s0 = inlined_call_operand.hbm [shape: f32[16,64], index: 0, kind: input, shape index: {}]   ;;  %s1426_s1 = inlined_call_operand.hbm [shape: f32[16,64], index: 1, kind: input, shape index: {}]   ;;  %s1427_s2 = inlined_call_operand.hbm [shape: f32[16,16], index: 2, kind: output, shape index: {}]  }
   0x1   :  { %9 = vsyncpa [#allocation3 + $0x1], 0 }
   0x2   :  { %10 = vsyncpa [#allocation6], 0 }
   0x3   :  { %11 = vsyncpa [#allocation4], 0 }
   0x4   :  { %13 = vsyncpa [#allocation4 + $0x1], 0  ;;  %s1183_s9 = smov 0   ;;  %s1185_s10 = smov 0  }
   0x5   :  { %s1187_s11 = smov 0   ;;  %s1189_s12 = smov 0  }
   0x6   :  { %s1191_s13 = smov 0   ;;  %s1193_s14 = smov 0  }
   0x7 LB: > { %s822_s15 = sadd.s32 4294967295, %s1158_s14   ;;  %s823_s16 = sadd.s32 4294967294, %s1158_s14   ;;  %s1158_s14 = sphi %s1193_s14, %s19_s14   ;;  %s1154_s13 = sphi %s1191_s13, %s1451_s13   ;;  %s1150_s12 = sphi %s1189_s12, %s1450_s12   ;;  %s1146_s11 = sphi %s1187_s11, %s1449_s11   ;;  %s1142_s10 = sphi %s1185_s10, %s1448_s10   ;;  %s1138_s9 = sphi %s1183_s9, %s1447_s9  }
   0x8   : > { %p51_p0 = scmp.ne.s32.totalorder %s1142_s10, %s1138_s9  ;;  %p1217_p1 = scmp.eq.s32.totalorder %s822_s15, 0 }
   0x9   : > { %p1221_p2 = scmp.eq.s32.totalorder %s822_s15, 1  ;;  %p109_p3 = scmp.eq.s32.totalorder %s823_s16, 1 }
   0xa   : > { %s1432_s17 = scalar_select %p1217_p1, 1, 0 }
   0xb   : > { %s1433_s18 = scalar_select %p1221_p2, 1, 0 }
   0xc   : > { %p1227_p4 = por %p1217_p1, %p51_p0  ;;  %p824_p5 = scmp.ge.s32.totalorder %s1158_s14, 1 }
   0xd   : > { %p1232_p6 = por %p109_p3, %p51_p0  ;;  %p116_p7 = scmp.lt.s32.totalorder %s1158_s14, 3 }
   0xe   : > { %s1434_s19 = scalar_select %p1227_p4, 1, 0 }
   0xf   : > { %s1435_s20 = scalar_select %p1232_p6, 1, 0 }
  0x10   : > { %p1237_p8 = pnand %p824_p5, %p116_p7  ;;  %s1160_s22 = smov [#allocation5]  }
  0x11   : > { %s131_s23 = sshll.u32 %s1160_s22, 4  ;;  %s31_s25 = sadd.s32 1, %s1154_s13  ;;  %s132_s23 = int_to_ptr.vmem [resolvable:$true] %s131_s23 }
  0x12   : > { %s1436_s21 = scalar_select %p1237_p8, 1, 0 }
  0x13   : > { %p932_p9 = pneg %p1237_p8  ;;  %s1014_s28 = scalar_lea.hbm %s1426_s1, 256 }
  0x14   : > { %p1015_p12 = scmp.ne.s32.totalorder %s1426_s1, %s1014_s28  ;;  %p1021_p5 = scmp.lt.u32.totalorder %s1014_s28, %s1426_s1 }
  0x15   : > { %p1246_p11 = pnand %p932_p9, %p1217_p1 }
  0x17   : > { %p1016_p13 = pneg %p1246_p11 }
  0x19   : > { %p1017_p0 = pnand %p1016_p13, %p1015_p12 }
  0x1b   : > { %p1018_p3 = pneg %p1017_p0 }
  0x1d   : > { %p1023_p7 = pnand %p1021_p5, %p1018_p3 }
  0x1f   : > { %1026 = shalt.err (!%p1023_p7)
}
  0x20   : > { %s1027_s5 = scalar_lea.vmem %s132_s23, 256  ;;  %p1035_p1 = scmp.lt.s32.totalorder %s132_s23, %s132_s23 }
  0x21   : > { %p1028_p9 = scmp.ne.s32.totalorder %s132_s23, %s1027_s5  ;;  %p1036_p4 = scmp.lt.s32.totalorder %s1027_s5, %s1027_s5 }
  0x23   : > { %p1030_p10 = pnand %p1028_p9, %p1016_p13  ;;  %p1037_p8 = por %p1036_p4, %p1035_p1 }
  0x25   : > { %p1031_p6 = pneg %p1030_p10 }
  0x27   : > { %p1038_p2 = pnand %p1037_p8, %p1031_p6 }
  0x29   : > { %1041 = shalt.err (!%p1038_p2)
}
  0x2a   : > { %s1161_s6 = smov 128   ;;  %s1162_s7 = smov 8  }
  0x2b   : > { %935 = dma.hbm_to_vmem [thread:$0]  (!%p1246_p11), %s1426_s1, 256, %s132_s23, [#allocation6], %s1161_s6, %s1161_s6, %s1162_s7  }
  0x2c   : > { %p33_p1 = scmp.ge.s32.totalorder %s31_s25, 2  ;;  %s38_s16 = sadd.s32 1, %s1146_s11 }
  0x2d   : > { %p45_p2 = scmp.ne.s32.totalorder %s1146_s11, %s1142_s10  ;;  %p46_p4 = scmp.eq.s32.totalorder %s1158_s14, 0 }
  0x2e   : > { %s1453_s25 = smov (%p33_p1, %s31_s25), 0  ;;  %p1439_p8 = scmp.ne.s32.totalorder %s1433_s18, 0 }
  0x2f   : > { %p1273_p6 = por %p46_p4, %p45_p2  ;;  %s35_s24 = ssub.s32 %s1154_s13, %s1453_s25 }
  0x30   : > { %p1279_p10 = por %p1439_p8, %p45_p2  ;;  %p945_p12 = scmp.lt.s32.totalorder %s1158_s14, 2 }
  0x31   : > { %p36_p11 = scmp.eq.s32.totalorder %s35_s24, 0  ;;  %s145_s23 = sand.u32 1, %s1146_s11  }
  0x32   : > { %s827_s27 = sshll.u32 %s145_s23, 3  ;;  %s828_s29 = sshll.u32 %s1154_s13, 7 }
  0x33   : > { %s1288_s28 = scalar_select %p36_p11, %s1146_s11, %s38_s16  }
  0x34   : > { %s1294_s4 = scalar_lea.hbm %s1425_s0, %s828_s29  ;;  %s149_s18 = scalar_lea.vmem [#allocation2], %s827_s27 }
  0x35   : > { %s156_s5 = sshll.u32 %s149_s18, 4  ;;  %p1300_p13 = pnand %p945_p12, %p1273_p6  ;;  %s1296_s5 = int_to_ptr.vmem [resolvable:$true] %s156_s5 }
  0x36   : > { %s146_s7 = scalar_lea.sflag [#allocation3], %s145_s23  ;;  %s1042_s8 = scalar_lea.hbm %s1294_s4, 128 }
  0x37   : > { %p1043_p0 = scmp.ne.s32.totalorder %s1294_s4, %s1042_s8  ;;  %p1044_p3 = pneg %p1300_p13 }
  0x38   : > { %s1047_s24 = scalar_lea.hbm %s1425_s0, 256  ;;  %p1048_p9 = scmp.lt.u32.totalorder %s1294_s4, %s1425_s0 }
  0x39   : > { %p1045_p5 = pnand %p1044_p3, %p1043_p0  ;;  %p1049_p1 = scmp.lt.u32.totalorder %s1047_s24, %s1042_s8 }
  0x3a   : > { %p1051_p4 = scmp.lt.u32.totalorder %s1042_s8, %s1294_s4 }
  0x3b   : > { %p1046_p7 = pneg %p1045_p5  ;;  %p1050_p2 = por %p1049_p1, %p1048_p9 }
  0x3d   : > { %p1052_p6 = por %p1051_p4, %p1050_p2 }
  0x3f   : > { %p1053_p8 = pnand %p1052_p6, %p1046_p7 }
  0x41   : > { %1056 = shalt.err (!%p1053_p8)
}
  0x42   : > { %s1057_s23 = scalar_lea.vmem %s1296_s5, 128  ;;  %s1163_s29 = smov [#allocation2]  }
  0x43   : > { %p1058_p12 = scmp.ne.s32.totalorder %s1296_s5, %s1057_s23  ;;  %s1062_s30 = sshll.u32 %s1163_s29, 4  ;;  %s1063_s30 = int_to_ptr.vmem [resolvable:$false] %s1062_s30 }
  0x44   : > { %s1064_s3 = scalar_lea.vmem %s1063_s30, 256  ;;  %p1065_p5 = scmp.lt.s32.totalorder %s1296_s5, %s1063_s30 }
  0x45   : > { %p1060_p11 = pnand %p1058_p12, %p1044_p3  ;;  %p1066_p9 = scmp.lt.s32.totalorder %s1064_s3, %s1057_s23 }
  0x47   : > { %p1061_p0 = pneg %p1060_p11  ;;  %p1067_p1 = por %p1066_p9, %p1065_p5 }
  0x49   : > { %p1068_p2 = pnand %p1067_p1, %p1061_p0 }
  0x4b   : > { %1071 = shalt.err (!%p1068_p2)
}
  0x4c   : > { %939 = dma.hbm_to_vmem [thread:$0]  (!%p1300_p13), %s1294_s4, 128, %s1296_s5, %s146_s7  }
  0x4d   : > { %p1442_p7 = scmp.ne.s32.totalorder %s1436_s21, 0 }
  0x4e   : > { %s1332_s18 = sand.u32 (!%p1442_p7), 1, %s1142_s10   ;;  %p1443_p3 = scmp.ne.s32.totalorder (!%p1442_p7), %s1434_s19, 0 }
  0x4f   : > { %165 = sbr.rel (%p1442_p7) target bundleno = 528 (0x210), region = 28  ;;  %s830_s8 = sshll.u32 (!%p1442_p7), %s1332_s18, 3 }
  0x50   : > { %s168_s15 = scalar_lea.sflag (!%p1442_p7), [#allocation3], %s1332_s18  ;;  %s171_s16 = scalar_lea.vmem (!%p1442_p7), [#allocation2], %s830_s8 }
  0x56   : > { %1125 = dma.done.wait (%p1443_p3), %s168_s15, 128  }
  0x57   : > { %1127 = vsyncadd (%p1443_p3), %s168_s15, 4294967168  ;;  %p1444_p13 = scmp.ne.s32.totalorder %s1432_s17, 0 }
  0x59   : > { %1129 = dma.done.wait (%p1444_p13), [#allocation6], 256  }
  0x5a   : > { %1131 = vsyncadd (%p1444_p13), [#allocation6], 4294967040  ;;  %v198_v0 = vld [vmem:[#allocation5] sm:$0xff]  ;;  %vm201_vm0 = vcmask 523264   ;;  %v199_v1 = vld [vmem:[#allocation5 + $0x8] sm:$0xff]  ;;  %v1164_v6 = vmov 0.0|0.0  }
  0x5b   : > { %v212_v2 = vmul.f32 %v198_v0, %v198_v0  ;;  %v213_v3 = vmul.f32 %v199_v1, %v199_v1  ;;  %897 = vmatprep.subr.bf16.mxu1 %v1164_v6  ;;  %906 = vmatprep.subr.bf16.mxu0 %v1164_v6  ;;  %vm1165_vm1 = vmmov 0   ;;  %v1166_v7 = vmov 0.0   ;;  %v197_v8 = vld [vmem:[%s171_s16] sm:$0xff]  ;;  %s834_s17 = sshll.u32 %s1150_s12, 7  ;;  %s195_s19 = scalar_lea.vmem [#allocation7], %s830_s8 }
  0x5c   : > { %859 = vmatprep.mubr.msk.f32.mxu1 %vm1165_vm1, %v1166_v7  ;;  %880 = vmatprep.mubr.msk.f32.mxu0 %vm1165_vm1, %v1166_v7  ;;  %v200_v9 = vmul.f32 %v197_v8, %v197_v8  ;;  %v246_v25 = vsel %vm201_vm0, %v197_v8, 0  ;;  %s731_s21 = sshll.u32 %s195_s19, 4  ;;  %vm714_vm8 = vcmask 130048   ;;  %s1376_s6 = scalar_lea.hbm %s1427_s2, %s834_s17  ;;  %s1378_s21 = int_to_ptr.vmem [resolvable:$true] %s731_s21 }
  0x5d   : > { %v214_v4 = vsel %vm201_vm0, %v212_v2, 0.0  ;;  %v217_v5 = vsel %vm201_vm0, %v213_v3, 0.0  ;;  %v321_v26 = vand.u32 4294901760, %v246_v25  ;;  %s717_s12 = scalar_lea.sflag [#allocation4], %s1332_s18  ;;  %s1072_s7 = scalar_lea.vmem %s1378_s21, 128 }
  0x5e   : > { %215 = vadd.xlane.f32.xlu0 %v214_v4  ;;  %v202_v10 = vsel %vm201_vm0, %v200_v9, 0.0  ;;  %p1073_p4 = scmp.ne.s32.totalorder %s1378_s21, %s1072_s7  ;;  %s1167_s24 = smov [#allocation7]  }
  0x5f   : > { %203 = vadd.xlane.f32.xlu1 %v202_v10  ;;  %v322_v30 = vsub.f32 %v246_v25, %v321_v26  ;;  %s1076_s22 = sshll.u32 %s1167_s24, 4  ;;  %s1077_s22 = int_to_ptr.vmem [resolvable:$false] %s1076_s22 }
  0x60   : > { %p1074_p6 = pnand %p1073_p4, %p1279_p10  ;;  %s1078_s27 = scalar_lea.vmem %s1077_s22, 256 }
  0x61   : > { %v323_v36 = vand.u32 4294901760, %v322_v30  ;;  %p1079_p12 = scmp.lt.s32.totalorder %s1378_s21, %s1077_s22  ;;  %p1080_p11 = scmp.lt.s32.totalorder %s1078_s27, %s1072_s7 }
  0x62   : > { %218 = vadd.xlane.f32.xlu0 %v217_v5  ;;  %p1075_p8 = pneg %p1074_p6 }
  0x63   : > { %v324_v41 = vsub.f32 %v322_v30, %v323_v36  ;;  %p1081_p0 = por %p1080_p11, %p1079_p12 }
  0x65   : > { %v325_v45 = vand.u32 4294901760, %v324_v41  ;;  %p1082_p5 = pnand %p1081_p0, %p1075_p8 }
  0xeb   : > { %v216_v11 = vpop.xlane.xlu0 %215 }
  0xec   : > { %1002 = vrsqrt.f32 %v216_v11  ;;  %vm222_vm2 = vcmp.eq.f32.partialorder %v216_v11, inf  ;;  %v225_v15 = vand.u32 2147483648, %v216_v11  ;;  %vm224_vm3 = vcmp.eq.f32.partialorder %v216_v11, 0.0  ;;  %v204_v51 = vpop.xlane.xlu1 %203 }
  0xed   : > { %vm207_vm6 = vcmp.eq.f32.partialorder %v204_v51, inf  ;;  %v210_v54 = vand.u32 2147483648, %v204_v51  ;;  %vm209_vm7 = vcmp.eq.f32.partialorder %v204_v51, 0.0 }
  0xef   : > { %v219_v12 = vpop.xlane.xlu0 %218 }
  0xf0   : > { %1004 = vrsqrt.f32 %v219_v12  ;;  %vm229_vm4 = vcmp.eq.f32.partialorder %v219_v12, inf  ;;  %v232_v21 = vand.u32 2147483648, %v219_v12  ;;  %vm231_vm5 = vcmp.eq.f32.partialorder %v219_v12, 0.0 }
  0xf6   : > { %v1003_v13 = vpop.eup %1002 }
  0xf7   : > { %v221_v14 = vmul.f32 %v1003_v13, %v216_v11 }
  0xf9   : > { %v223_v16 = vsel %vm222_vm2, %v216_v11, %v221_v14 }
  0xfa   : > { %v1005_v17 = vpop.eup %1004  ;;  %v226_v18 = vsel %vm224_vm3, %v225_v15, %v223_v16 }
  0xfb   : > { %v237_v19 = vmax.f32 %v226_v18, 1e-08  ;;  %v228_v20 = vmul.f32 %v1005_v17, %v219_v12 }
  0xfd   : > { %1006 = vrcp.f32 %v237_v19  ;;  %v230_v22 = vsel %vm229_vm4, %v219_v12, %v228_v20 }
  0xfe   : > { %v233_v23 = vsel %vm231_vm5, %v232_v21, %v230_v22 }
  0xff   : > { %v238_v24 = vmax.f32 %v233_v23, 1e-08 }
 0x101   : > { %1008 = vrcp.f32 %v238_v24 }
 0x102   : > { %1010 = vrsqrt.f32 %v204_v51 }
 0x107   : > { %v1007_v27 = vpop.eup %1006 }
 0x108   : > { %v243_v28 = vmul.f32 %v1007_v27, %v198_v0 }
 0x10a   : > { %v249_v29 = vsel %vm201_vm0, %v243_v28, 0 }
 0x10b   : > { %v1009_v31 = vpop.eup %1008  ;;  %v255_v32 = vand.u32 4294901760, %v249_v29 }
 0x10c   : > { %v244_v33 = vmul.f32 %v1009_v31, %v199_v1  ;;  %v1011_v52 = vpop.eup %1010 }
 0x10d   : > { %v333_v34 = vsub.f32 %v249_v29, %v255_v32  ;;  %v206_v53 = vmul.f32 %v1011_v52, %v204_v51 }
 0x10e   : > { %v252_v35 = vsel %vm201_vm0, %v244_v33, 0 }
 0x10f   : > { %v258_v37 = vand.u32 4294901760, %v252_v35  ;;  %v334_v38 = vand.u32 4294901760, %v333_v34  ;;  %v208_v55 = vsel %vm207_vm6, %v204_v51, %v206_v53 }
 0x110   : > { %v211_v56 = vsel %vm209_vm7, %v210_v54, %v208_v55 }
 0x111   : > { %v898_v39 = vpack.c.bf16 %v258_v37, %v255_v32  ;;  %v340_v40 = vsub.f32 %v252_v35, %v258_v37  ;;  %v335_v42 = vsub.f32 %v333_v34, %v334_v38  ;;  %v234_v57 = vmax.f32 %v211_v56, 1e-08 }
 0x113   : > { %899 = vmatpush3.bf16.xpose.msra.mxu1 %v898_v39  ;;  %908 = vmatpush3.bf16.xpose.msra.mxu0 %v898_v39  ;;  %v341_v43 = vand.u32 4294901760, %v340_v40  ;;  %v336_v46 = vand.u32 4294901760, %v335_v42  ;;  %v904_v50 = vpack.c.bf16 %v340_v40, %v333_v34  ;;  %1012 = vrcp.f32 %v234_v57 }
 0x114   : > { %900 = vmatprep.subr.bf16.mxu1 %v1164_v6  ;;  %909 = vmatprep.subr.bf16.mxu0 %v1164_v6 }
 0x115   : > { %v342_v44 = vsub.f32 %v340_v40, %v341_v43  ;;  %v910_v49 = vpack.c.bf16 %v341_v43, %v334_v38 }
 0x117   : > { %v343_v47 = vand.u32 4294901760, %v342_v44 }
 0x119   : > { %v901_v48 = vpack.c.bf16 %v343_v47, %v336_v46 }
 0x11a   : > { %860 = vmatmul.mubr.f32.vlgmr.msra.gmra.mrb[0].mxu1 %v325_v45  ;;  %881 = vmatmul.mubr.f32.vlgmr.msra.gmra.mrb[0].mxu0 %v323_v36 }
 0x11b   : > { %902 = vmatpush3.bf16.xpose.msra.mxu1 %v901_v48  ;;  %911 = vmatpush3.bf16.xpose.msra.mxu0 %v910_v49 }
 0x11c   : > { %866 = vmatprep.mubr.msk.f32.mxu1 %vm1165_vm1, %v1166_v7  ;;  %887 = vmatprep.mubr.msk.f32.mxu0 %vm1165_vm1, %v1166_v7 }
 0x11d   : > { %903 = vmatprep.subr.bf16.mxu1 %v1164_v6  ;;  %912 = vmatprep.subr.bf16.mxu0 %v1164_v6  ;;  %v1013_v58 = vpop.eup %1012 }
 0x11e   : > { %v236_v61 = vmul.f32 20.0, %v1013_v58 }
 0x122   : > { %867 = vmatmul.mubr.f32.vlgmr.msra.gmra.mrb[0].mxu1 %v321_v26  ;;  %888 = vmatmul.mubr.f32.vlgmr.msra.gmra.mrb[0].mxu0 %v321_v26 }
 0x123   : > { %905 = vmatpush3.bf16.xpose.msra.mxu1 %v904_v50  ;;  %914 = vmatpush3.bf16.xpose.msra.mxu0 %v898_v39 }
 0x124   : > { %873 = vmatprep.mubr.msk.f32.mxu1 %vm1165_vm1, %v1166_v7  ;;  %894 = vmatprep.mubr.msk.f32.mxu0 %vm1165_vm1, %v1166_v7 }
 0x12a   : > { %874 = vmatmul.mubr.f32.vlgmr.msra.gmra.mrb[0].mxu1 %v322_v30  ;;  %895 = vmatmul.mubr.f32.vlgmr.msra.gmra.mrb[0].mxu0 %v321_v26 }
 0x1fd   : > { %v484_v59 = vpop.f32.mrb[0].mxu1  ;;  %v709_v60 = vpop.f32.mrb[0].mxu0 }
 0x1fe   : > { %v915_v62 = vadd.f32 %v709_v60, %v484_v59  ;;  %v875_v63 = vpop.f32.mrb[1].mxu1  ;;  %v896_v0 = vpop.f32.mrb[1].mxu0 }
 0x200   : > { %v713_v1 = vmul.f32 %v915_v62, %v236_v61 }
 0x202   : > { %715 = vst.msk [vmem:[%s195_s19] sm:$0xff] %vm714_vm8, %v713_v1 }
 0x203   : > { %1085 = shalt.err (!%p1082_p5)
}
 0x204   : > { %s1086_s23 = scalar_lea.hbm %s1376_s6, 128  ;;  %s1090_s3 = scalar_lea.hbm %s1427_s2, 256 }
 0x205   : > { %p1087_p9 = scmp.ne.s32.totalorder %s1376_s6, %s1086_s23  ;;  %p1091_p7 = scmp.lt.u32.totalorder %s1376_s6, %s1427_s2 }
 0x206   : > { %p1092_p3 = scmp.lt.u32.totalorder %s1090_s3, %s1086_s23  ;;  %p1094_p4 = scmp.lt.u32.totalorder %s1086_s23, %s1376_s6 }
 0x207   : > { %p1088_p1 = pnand %p1087_p9, %p1279_p10 }
 0x208   : > { %p1093_p13 = por %p1092_p3, %p1091_p7 }
 0x209   : > { %p1089_p2 = pneg %p1088_p1 }
 0x20a   : > { %p1095_p6 = por %p1094_p4, %p1093_p13 }
 0x20c   : > { %p1096_p8 = pnand %p1095_p6, %p1089_p2 }
 0x20e   : > { %1099 = shalt.err (!%p1096_p8)
}
 0x20f   : > { %930 = dma.vmem_to_hbm [thread:$0]  (%p1279_p10), %s1378_s21, 128, %s1376_s6, %s717_s12  }
 0x210 PF: > { %s743_s15 = sand.u32 1, %s1138_s9   ;;  %p1445_p12 = scmp.ne.s32.totalorder %s1435_s20, 0 }
 0x211   : > { %p1446_p11 = scmp.ge.s32.totalorder %s1158_s14, 2  ;;  %s744_s16 = scalar_lea.sflag [#allocation4], %s743_s15 }
 0x213   : > { %p941_p0 = pnand %p1446_p11, %p1445_p12 }
 0x215   : > { %1133 = dma.done.wait (!%p941_p0), %s744_s16, 128  }
 0x216   : > { %1135 = vsyncadd (!%p941_p0), %s744_s16, 4294967168  ;;  %s19_s14 = sadd.s32 1, %s1158_s14   ;;  %s1447_s9 = smov %s1142_s10 }
 0x217   : > { %p16_p5 = scmp.ge.s32.totalorder %s19_s14, 4   ;;  %s1448_s10 = smov %s1146_s11 }
 0x218   : > { %s1449_s11 = smov %s1288_s28  ;;  %s1450_s12 = smov %s1154_s13 }
 0x219   : > { %s1451_s13 = smov %s1453_s25  ;;  %18 = sbr.rel (!%p16_p5) target bundleno = 7 (0x7), region = 78 }
 0x220   :  { %749 = vsyncpa [#allocation3], 1 }
 0x221   :  { %751 = vsyncpa [#allocation3 + $0x1], 1 }
 0x222   :  { %752 = vsyncpa [#allocation6], 1 }
 0x223   :  { %753 = vsyncpa [#allocation4], 1 }
 0x224   :  { %755 = vsyncpa [#allocation4 + $0x1], 1 }

</bundles_post_ra>
